<compile_context>
chip_gen: v7x
topology: tpu7x:2x2x1
jax: 0.10.0
libtpu: 0.0.40
codegen_flags: <defaults>
</compile_context>

<pallas_src>
import functools

import jax
import jax.numpy as jnp
from jax.experimental import pallas as pl
from jax.experimental.pallas import tpu as pltpu


# ------------------------------ helpers ------------------------------------ #

def _round_up(x, m):
    return ((x + m - 1) // m) * m


def _pad_to(x, shape):
    pads = [(0, s - d) for d, s in zip(x.shape, shape)]
    return jnp.pad(x, pads)


# --------------------------- Pallas kernels --------------------------------- #

def _transform_kernel(d_ref, x_ref, w_ref, h_ref):
    """H_tile = (d_inv_sqrt * X)_tile @ W   (f32 matmul, stored bf16)."""
    xs = x_ref[...] * d_ref[...]                     # [TM, Fin] * [TM, 1]
    h = jnp.dot(xs, w_ref[...], preferred_element_type=jnp.float32)
    h_ref[...] = h.astype(h_ref.dtype)


def gcn_transform(d_col, x, w, tm):
    """Row-tiled dense transform: returns bf16 H = (d * X) @ W, shape [N_pad, Fout_pad]."""
    n_pad, f_in = x.shape
    f_out = w.shape[1]
    grid = (n_pad // tm,)
    return pl.pallas_call(
        _transform_kernel,
        out_shape=jax.ShapeDtypeStruct((n_pad, f_out), jnp.bfloat16),
        grid_spec=pltpu.PrefetchScalarGridSpec(
            num_scalar_prefetch=0,
            grid=grid,
            in_specs=[
                pl.BlockSpec((tm, 1), lambda i: (i, 0)),        # d^{-1/2} column
                pl.BlockSpec((tm, f_in), lambda i: (i, 0)),     # X rows
                pl.BlockSpec((f_in, f_out), lambda i: (0, 0)),  # W (resident)
            ],
            out_specs=pl.BlockSpec((tm, f_out), lambda i: (i, 0)),
        ),
        compiler_params=pltpu.CompilerParams(
            dimension_semantics=("parallel",),
            vmem_limit_bytes=32 * 1024 * 1024,
        ),
        cost_estimate=pl.CostEstimate(
            flops=2 * n_pad * f_in * f_out,
            transcendentals=0,
            bytes_accessed=4 * n_pad * f_in + 4 * f_in * f_out + 2 * n_pad * f_out,
        ),
    )(d_col, x, w)


def _aggregate_kernel(a_ref, h_ref, d_ref, b_ref, o_ref, acc_ref, *, apply_relu):
    """acc += A_tile @ H_tile; epilogue: out = relu?(d * acc + b)."""
    k = pl.program_id(1)

    @pl.when(k == 0)
    def _():
        acc_ref[...] = jnp.zeros_like(acc_ref)

    acc_ref[...] += jnp.dot(a_ref[...], h_ref[...],
                            preferred_element_type=jnp.float32)

    @pl.when(k == pl.num_programs(1) - 1)
    def _():
        out = acc_ref[...] * d_ref[...] + b_ref[...]
        if apply_relu:
            out = jnp.maximum(out, 0.0)
        o_ref[...] = out.astype(o_ref.dtype)


def gcn_aggregate(a_bf16, h_bf16, d_col, bias, tm, tk, apply_relu):
    """Tiled aggregation: relu?( d * ((A+I) @ H) + b ), f32 output [N_pad, Fout_pad]."""
    n_pad = a_bf16.shape[0]
    f_out = h_bf16.shape[1]
    grid = (n_pad // tm, n_pad // tk)
    kernel = functools.partial(_aggregate_kernel, apply_relu=apply_relu)
    return pl.pallas_call(
        kernel,
        out_shape=jax.ShapeDtypeStruct((n_pad, f_out), jnp.float32),
        grid_spec=pltpu.PrefetchScalarGridSpec(
            num_scalar_prefetch=0,
            grid=grid,
            in_specs=[
                pl.BlockSpec((tm, tk), lambda i, k: (i, k)),      # A+I (bf16)
                pl.BlockSpec((tk, f_out), lambda i, k: (k, 0)),   # H   (bf16)
                pl.BlockSpec((tm, 1), lambda i, k: (i, 0)),       # d^{-1/2}
                pl.BlockSpec((1, f_out), lambda i, k: (0, 0)),    # bias
            ],
            out_specs=pl.BlockSpec((tm, f_out), lambda i, k: (i, 0)),
            scratch_shapes=[pltpu.VMEM((tm, f_out), jnp.float32)],
        ),
        compiler_params=pltpu.CompilerParams(
            dimension_semantics=("parallel", "arbitrary"),
            vmem_limit_bytes=32 * 1024 * 1024,
        ),
        cost_estimate=pl.CostEstimate(
            flops=2 * n_pad * n_pad * f_out,
            transcendentals=0,
            bytes_accessed=(2 * n_pad * n_pad                      # A (bf16)
                            + 2 * (n_pad // tm) * n_pad * f_out    # H re-reads (bf16)
                            + 4 * n_pad * f_out),                  # output (f32)
        ),
    )(a_bf16, h_bf16, d_col, bias)


# ------------------------------- Glue (JAX) -------------------------------- #

def build_adj(edge_index, num_nodes):
    """Dense (A + I) with per-edge multiplicity + add_remaining_self_loops semantics,
    and the symmetric-normalization vector d^{-1/2}.  A[dst, src] carries src->dst."""
    src, dst = edge_index[0], edge_index[1]
    a = jnp.zeros((num_nodes, num_nodes), jnp.float32)
    a = a.at[dst, src].add(1.0)                         # one message per edge
    diag = jnp.diagonal(a)
    a = a + jnp.diag(jnp.where(diag > 0.0, 0.0, 1.0))   # add self-loop only if missing
    deg = jnp.sum(a, axis=1)
    d_inv_sqrt = jnp.where(deg > 0.0, jax.lax.rsqrt(deg), 0.0)
    return a, d_inv_sqrt


def init_gnn_encoder_params(key, in_dim, hidden_dim, num_unit):
    """Glorot-uniform weights + zero biases for (num_unit + 1) GCNConv layers."""
    params = []
    dims = [(in_dim, hidden_dim)] + [(hidden_dim, hidden_dim)] * num_unit
    for (fi, fo) in dims:
        key, sub = jax.random.split(key)
        limit = jnp.sqrt(6.0 / (fi + fo))
        w = jax.random.uniform(sub, (fi, fo), jnp.float32, -limit, limit)
        b = jnp.zeros((1, fo), jnp.float32)
        params.append((w, b))
    return params


def gnn_encoder_forward(x, edge_index, params):
    """Forward pass of GNNEncoder (gnn='GCN', dropout=0.0, batch_norm=False)."""
    n, _ = x.shape
    f_out_final = params[-1][0].shape[1]

    a, d_inv_sqrt = build_adj(edge_index, n)

    # Tile / pad sizes: lanes need multiples of 128; tiles of 128/256 suit the
    # 128-wide (v5e) and 256-wide (v6e/v7x) MXU and stay far under v7x's VMEM.
    tile = min(256, _round_up(n, 128))
    n_pad = _round_up(n, tile)

    a_p = _pad_to(a, (n_pad, n_pad)).astype(jnp.bfloat16)   # 0/1/2 -> exact in bf16
    d_p = _pad_to(d_inv_sqrt[:, None], (n_pad, 1)).astype(jnp.float32)

    h = _pad_to(x.astype(jnp.float32),
                (n_pad, _round_up(x.shape[1], 128)))

    for idx, (w, b) in enumerate(params):
        f_i, f_o = w.shape
        fi_pad, fo_pad = _round_up(f_i, 128), _round_up(f_o, 128)
        w_p = _pad_to(w, (fi_pad, fo_pad))
        b_p = _pad_to(b, (1, fo_pad))
        apply_relu = idx < len(params) - 1        # all convs but the last -> ReLU

        h_bf = gcn_transform(d_p, h, w_p, tile)                      # (D^-1/2 X) W
        h = gcn_aggregate(a_p, h_bf, d_p, b_p, tile, tile, apply_relu)

    return h[:n, :f_out_final]
    # TODO(synk): SAGE/GAT/GIN conv variants and training-time dropout/BatchNorm are
    # not implemented; this covers the gnn='GCN' inference branch (module defaults).


# --------------------------------- Main ------------------------------------ #

if __name__ == "__main__":
    key = jax.random.PRNGKey(0)

    num_nodes = 16
    in_dim = 8
    hidden_dim = 32
    num_unit = 2   # -> 3 GCNConv layers total

    k_x, k_e, k_p = jax.random.split(key, 3)

    # Node features [N, in_dim]
    x = jax.random.normal(k_x, (num_nodes, in_dim), jnp.float32)

    # Deterministic small graph: ring edges (both directions) + a few random edges
    ring_src = jnp.arange(num_nodes, dtype=jnp.int32)
    ring_dst = (ring_src + 1) % num_nodes
    extra_src = jax.random.randint(k_e, (8,), 0, num_nodes, dtype=jnp.int32)
    extra_dst = (extra_src + 5) % num_nodes
    src = jnp.concatenate([ring_src, ring_dst, extra_src, extra_dst])
    dst = jnp.concatenate([ring_dst, ring_src, extra_dst, extra_src])
    edge_index = jnp.stack([src, dst], axis=0)  # [2, E]

    params = init_gnn_encoder_params(k_p, in_dim, hidden_dim, num_unit)

    out = gnn_encoder_forward(x, edge_index, params)
    out = jax.block_until_ready(out)

    assert out.shape == (num_nodes, hidden_dim)
    assert out.dtype == jnp.float32
    print("KERNEL_OK")
</pallas_src>

<mosaic_0001>
module attributes {stable_mosaic.version = 11 : i64} {
  func.func @_transform_kernel(%arg0: i32, %arg1: memref<128x1xf32, #tpu.memory_space<vmem>>, %arg2: memref<128x128xf32, #tpu.memory_space<vmem>>, %arg3: memref<128x128xf32, #tpu.memory_space<vmem>>, %arg4: memref<128x128xbf16, #tpu.memory_space<vmem>>) attributes {dimension_semantics = [#tpu.dimension_semantics<parallel>], iteration_bounds = array<i64: 1>, scalar_prefetch = 0 : i64, scratch_operands = 0 : i64, tpu.core_type = #tpu.core_type<tc>, window_params = [{transform_indices = @transform_0, window_bounds = array<i64: 128, 1>}, {transform_indices = @transform_1, window_bounds = array<i64: 128, 128>}, {pipeline_mode = #tpu.pipeline_mode<synchronous>, transform_indices = @transform_2, window_bounds = array<i64: 128, 128>}, {transform_indices = @transform_3, window_bounds = array<i64: 128, 128>}]} {
    %c0 = arith.constant 0 : index
    %c0_0 = arith.constant 0 : index
    %0 = vector.load %arg2[%c0, %c0_0] : memref<128x128xf32, #tpu.memory_space<vmem>>, vector<128x128xf32>
    %c0_1 = arith.constant 0 : index
    %c0_2 = arith.constant 0 : index
    %1 = vector.load %arg1[%c0_1, %c0_2] : memref<128x1xf32, #tpu.memory_space<vmem>>, vector<128x1xf32>
    %2 = vector.broadcast %1 : vector<128x1xf32> to vector<128x128xf32>
    %3 = arith.mulf %0, %2 : vector<128x128xf32>
    %c0_3 = arith.constant 0 : index
    %c0_4 = arith.constant 0 : index
    %4 = vector.load %arg3[%c0_3, %c0_4] : memref<128x128xf32, #tpu.memory_space<vmem>>, vector<128x128xf32>
    %cst = arith.constant dense<0.000000e+00> : vector<128x128xf32>
    %5 = tpu.matmul %3, %4, %cst {dimension_numbers = #tpu.dot_dimension_numbers<[1], [0], [0], [1], [0, 0, 1, 1], [], []>} : vector<128x128xf32>, vector<128x128xf32>, vector<128x128xf32> -> vector<128x128xf32>
    %6 = arith.truncf %5 : vector<128x128xf32> to vector<128x128xbf16>
    %c0_5 = arith.constant 0 : index
    %c0_6 = arith.constant 0 : index
    %7 = vector.load %arg4[%c0_5, %c0_6] : memref<128x128xbf16, #tpu.memory_space<vmem>>, vector<128x128xbf16>
    tpu.vector_store %arg4[%c0_5, %c0_6], %6 {strides = array<i32>} : memref<128x128xbf16, #tpu.memory_space<vmem>>, vector<128x128xbf16>,
    return
  }
  func.func @transform_0(%arg0: i32) -> (i32, i32) {
    %c0_i32 = arith.constant 0 : i32
    %c0_i32_0 = arith.constant 0 : i32
    return %arg0, %c0_i32 : i32, i32
  }
  func.func @transform_1(%arg0: i32) -> (i32, i32) {
    %c0_i32 = arith.constant 0 : i32
    %c0_i32_0 = arith.constant 0 : i32
    return %arg0, %c0_i32 : i32, i32
  }
  func.func @transform_2(%arg0: i32) -> (i32, i32) {
    %c0_i32 = arith.constant 0 : i32
    %c0_i32_0 = arith.constant 0 : i32
    %c0_i32_1 = arith.constant 0 : i32
    return %c0_i32, %c0_i32_0 : i32, i32
  }
  func.func @transform_3(%arg0: i32) -> (i32, i32) {
    %c0_i32 = arith.constant 0 : i32
    %c0_i32_0 = arith.constant 0 : i32
    return %arg0, %c0_i32 : i32, i32
  }
}

</mosaic_0001>

<bundles_post_ra>
// kernel: tpu_custom_call.1
= control target key start
LH: loop header
LB: loop body
LE: loop exit
PB: predicated region body
PF: predicated region fallthrough
CT: control target
= control target key end

     0   :  { %8 = vsyncpa [#allocation3], 0  ;;  %s834_s0 = inlined_call_operand.vmem [shape: f32[128,1], index: 0, kind: input, shape index: {}]   ;;  %s835_s1 = inlined_call_operand.vmem [shape: f32[128,128], index: 1, kind: input, shape index: {}]   ;;  %s836_s2 = inlined_call_operand.hbm [shape: f32[128,128], index: 2, kind: input, shape index: {}]   ;;  %s837_s3 = inlined_call_operand.hbm [shape: bf16[128,128], index: 3, kind: output, shape index: {}]  }
   0x1   :  { %9 = vsyncpa [#allocation4], 0  ;;  %s687_s12 = smov [#allocation2]   ;;  %s639_s16 = scalar_lea.hbm %s836_s2, 2048 }
   0x2   :  { %s19_s13 = sshll.u32 %s687_s12, 4  ;;  %p640_p0 = scmp.ne.s32.totalorder %s836_s2, %s639_s16  ;;  %s20_s13 = int_to_ptr.vmem [resolvable:$true] %s19_s13 }
   0x3   :  { %p643_p1 = scmp.lt.u32.totalorder %s639_s16, %s836_s2 }
   0x5   :  { %p645_p2 = pnand %p643_p1, %p640_p0 }
   0x7   :  { %648 = shalt.err (!%p645_p2)
}
   0x8   :  { %s649_s21 = scalar_lea.vmem %s20_s13, 2048  ;;  %p654_p4 = scmp.lt.s32.totalorder %s20_s13, %s20_s13 }
   0x9   :  { %p650_p3 = scmp.ne.s32.totalorder %s20_s13, %s649_s21  ;;  %p655_p5 = scmp.lt.s32.totalorder %s649_s21, %s649_s21 }
   0xb   :  { %p656_p6 = por %p655_p5, %p654_p4 }
   0xd   :  { %p657_p7 = pnand %p656_p6, %p650_p3 }
   0xf   :  { %660 = shalt.err (!%p657_p7)
}
  0x10   :  { %s688_s22 = smov 128   ;;  %s689_s23 = smov 8  }
  0x11   :  { %25 = dma.hbm_to_vmem [thread:$0]  %s836_s2, 2048, %s20_s13, [#allocation3], %s688_s22, %s688_s22, %s689_s23  }
  0x12   :  { %683 = dma.done.wait [#allocation3], 2048  }
  0x13   :  { %684 = vsyncadd [#allocation3], 4294965248  ;;  %v690_v0 = vmov 0   ;;  %v46_v1 = vld [vmem:[%s834_s0 + $0x8] sm:$0xff]  ;;  %v45_v2 = vld [vmem:[%s834_s0] sm:$0xff] }
  0x14   :  { %638 = vset.pattern.permute.xlu1 %v690_v0  ;;  %637 = vset.pattern.permute.xlu0 %v690_v0  ;;  %v54_v3 = vld [vmem:[%s834_s0 + $0x48] sm:$0xff]  ;;  %v53_v4 = vld [vmem:[%s834_s0 + $0x40] sm:$0xff]  ;;  %v55_v5 = vld [vmem:[%s834_s0 + $0x50] sm:$0xff] }
  0x15   :  { %68 = vperm.xlu1 %638, %v46_v1   ;;  %63 = vperm.xlu0 %637, %v45_v2   ;;  %v157_v6 = vld [vmem:[#allocation2] sm:$0xff]  ;;  %v158_v7 = vld [vmem:[#allocation2 + $0x8] sm:$0xff]  ;;  %v47_v8 = vld [vmem:[%s834_s0 + $0x10] sm:$0xff] }
  0x16   :  { %v582_v9 = vpack.c.bf16 %v158_v7, %v157_v6  ;;  %v159_v10 = vld [vmem:[#allocation2 + $0x10] sm:$0xff]  ;;  %v160_v11 = vld [vmem:[#allocation2 + $0x18] sm:$0xff]  ;;  %v161_v13 = vld [vmem:[#allocation2 + $0x20] sm:$0xff] }
  0x17   :  { %v586_v12 = vpack.c.bf16 %v160_v11, %v159_v10  ;;  %v162_v14 = vld [vmem:[#allocation2 + $0x28] sm:$0xff]  ;;  %v56_v15 = vld [vmem:[%s834_s0 + $0x58] sm:$0xff]  ;;  %v163_v18 = vld [vmem:[#allocation2 + $0x30] sm:$0xff] }
  0x18   :  { %583 = vmatprep.subr.bf16.mxu0 %v582_v9  ;;  %614 = vmatprep.subr.bf16.mxu1 %v582_v9  ;;  %v48_v16 = vld [vmem:[%s834_s0 + $0x18] sm:$0xff]  ;;  %v590_v17 = vpack.c.bf16 %v162_v14, %v161_v13  ;;  %v57_v20 = vld [vmem:[%s834_s0 + $0x60] sm:$0xff]  ;;  %v166_v24 = vld [vmem:[#allocation2 + $0x48] sm:$0xff] }
  0x19   :  { %108 = vperm.xlu1 %638, %v54_v3   ;;  %103 = vperm.xlu0 %637, %v53_v4   ;;  %v164_v19 = vld [vmem:[#allocation2 + $0x38] sm:$0xff]  ;;  %v49_v21 = vld [vmem:[%s834_s0 + $0x20] sm:$0xff]  ;;  %v58_v25 = vld [vmem:[%s834_s0 + $0x68] sm:$0xff] }
  0x1a   :  { %585 = vmatpush3.bf16.msra.mxu0 %v582_v9  ;;  %622 = vmatpush3.bf16.msra.mxu1 %v582_v9  ;;  %v594_v22 = vpack.c.bf16 %v164_v19, %v163_v18  ;;  %v165_v23 = vld [vmem:[#allocation2 + $0x40] sm:$0xff]  ;;  %v50_v26 = vld [vmem:[%s834_s0 + $0x28] sm:$0xff]  ;;  %v167_v28 = vld [vmem:[#allocation2 + $0x50] sm:$0xff] }
  0x1b   :  { %587 = vmatprep.subr.bf16.mxu0 %v586_v12  ;;  %615 = vmatprep.subr.bf16.mxu1 %v586_v12  ;;  %v598_v27 = vpack.c.bf16 %v166_v24, %v165_v23  ;;  %v168_v29 = vld [vmem:[#allocation2 + $0x58] sm:$0xff]  ;;  %v59_v30 = vld [vmem:[%s834_s0 + $0x70] sm:$0xff]  ;;  %v169_v33 = vld [vmem:[#allocation2 + $0x60] sm:$0xff] }
  0x1c   :  { %v51_v31 = vld [vmem:[%s834_s0 + $0x30] sm:$0xff]  ;;  %v602_v32 = vpack.c.bf16 %v168_v29, %v167_v28  ;;  %v170_v34 = vld [vmem:[#allocation2 + $0x68] sm:$0xff]  ;;  %v60_v35 = vld [vmem:[%s834_s0 + $0x78] sm:$0xff] }
  0x1d   :  { %113 = vperm.xlu1 %638, %v55_v5   ;;  %73 = vperm.xlu0 %637, %v47_v8   ;;  %v52_v36 = vld [vmem:[%s834_s0 + $0x38] sm:$0xff]  ;;  %v606_v37 = vpack.c.bf16 %v170_v34, %v169_v33  ;;  %v171_v38 = vld [vmem:[#allocation2 + $0x70] sm:$0xff]  ;;  %v30_v41 = vld [vmem:[%s835_s1 + $0x8] sm:$0xff] }
  0x1e   :  { %589 = vmatpush3.bf16.msra.mxu0 %v586_v12  ;;  %623 = vmatpush3.bf16.msra.mxu1 %v586_v12  ;;  %v172_v39 = vld [vmem:[#allocation2 + $0x78] sm:$0xff]  ;;  %v29_v42 = vld [vmem:[%s835_s1] sm:$0xff]  ;;  %v38_v47 = vld [vmem:[%s835_s1 + $0x48] sm:$0xff] }
  0x1f   :  { %591 = vmatprep.subr.bf16.mxu0 %v590_v17  ;;  %616 = vmatprep.subr.bf16.mxu1 %v590_v17  ;;  %v610_v40 = vpack.c.bf16 %v172_v39, %v171_v38  ;;  %v37_v48 = vld [vmem:[%s835_s1 + $0x40] sm:$0xff]  ;;  %v39_v53 = vld [vmem:[%s835_s1 + $0x50] sm:$0xff]  ;;  %v40_v59 = vld [vmem:[%s835_s1 + $0x58] sm:$0xff] }
  0x20   :  { %v31_v54 = vld [vmem:[%s835_s1 + $0x10] sm:$0xff]  ;;  %v32_v60 = vld [vmem:[%s835_s1 + $0x18] sm:$0xff]  ;;  %v41_v1 = vld [vmem:[%s835_s1 + $0x60] sm:$0xff] }
  0x21   :  { %118 = vperm.xlu1 %638, %v56_v15   ;;  %78 = vperm.xlu0 %637, %v48_v16   ;;  %v33_v2 = vld [vmem:[%s835_s1 + $0x20] sm:$0xff]  ;;  %v42_v7 = vld [vmem:[%s835_s1 + $0x68] sm:$0xff]  ;;  %v43_v13 = vld [vmem:[%s835_s1 + $0x70] sm:$0xff] }
  0x22   :  { %593 = vmatpush3.bf16.msra.mxu0 %v590_v17  ;;  %624 = vmatpush3.bf16.msra.mxu1 %v590_v17  ;;  %v34_v8 = vld [vmem:[%s835_s1 + $0x28] sm:$0xff]  ;;  %v35_v14 = vld [vmem:[%s835_s1 + $0x30] sm:$0xff]  ;;  %v44_v19 = vld [vmem:[%s835_s1 + $0x78] sm:$0xff] }
  0x23   :  { %595 = vmatprep.subr.bf16.mxu0 %v594_v22  ;;  %617 = vmatprep.subr.bf16.mxu1 %v594_v22 }
  0x25   :  { %123 = vperm.xlu1 %638, %v57_v20   ;;  %83 = vperm.xlu0 %637, %v49_v21   ;;  %v36_v20 = vld [vmem:[%s835_s1 + $0x38] sm:$0xff]  ;;  %s691_s1 = smov [#allocation5]  }
  0x26   :  { %597 = vmatpush3.bf16.msra.mxu0 %v594_v22  ;;  %625 = vmatpush3.bf16.msra.mxu1 %v594_v22  ;;  %s403_s2 = sshll.u32 %s691_s1, 4  ;;  %s404_s2 = int_to_ptr.vmem [resolvable:$true] %s403_s2 }
  0x27   :  { %599 = vmatprep.subr.bf16.mxu0 %v598_v27  ;;  %618 = vmatprep.subr.bf16.mxu1 %v598_v27  ;;  %s661_s5 = scalar_lea.vmem %s404_s2, 1024  ;;  %p666_p9 = scmp.lt.s32.totalorder %s404_s2, %s404_s2 }
  0x28   :  { %p662_p8 = scmp.ne.s32.totalorder %s404_s2, %s661_s5  ;;  %p667_p10 = scmp.lt.s32.totalorder %s661_s5, %s661_s5 }
  0x29   :  { %128 = vperm.xlu1 %638, %v58_v25   ;;  %88 = vperm.xlu0 %637, %v50_v26  }
  0x2a   :  { %601 = vmatpush3.bf16.msra.mxu0 %v598_v27  ;;  %626 = vmatpush3.bf16.msra.mxu1 %v598_v27  ;;  %p668_p11 = por %p667_p10, %p666_p9 }
  0x2b   :  { %603 = vmatprep.subr.bf16.mxu0 %v602_v32  ;;  %619 = vmatprep.subr.bf16.mxu1 %v602_v32 }
  0x2c   :  { %p669_p12 = pnand %p668_p11, %p662_p8 }
  0x2d   :  { %133 = vperm.xlu1 %638, %v59_v30   ;;  %93 = vperm.xlu0 %637, %v51_v31  }
  0x2e   :  { %605 = vmatpush3.bf16.msra.mxu0 %v602_v32  ;;  %627 = vmatpush3.bf16.msra.mxu1 %v602_v32 }
  0x2f   :  { %607 = vmatprep.subr.bf16.mxu0 %v606_v37  ;;  %620 = vmatprep.subr.bf16.mxu1 %v606_v37 }
  0x31   :  { %138 = vperm.xlu1 %638, %v60_v35   ;;  %98 = vperm.xlu0 %637, %v52_v36  }
  0x32   :  { %609 = vmatpush3.bf16.msra.mxu0 %v606_v37  ;;  %628 = vmatpush3.bf16.msra.mxu1 %v606_v37 }
  0x33   :  { %611 = vmatprep.subr.bf16.mxu0 %v610_v40  ;;  %621 = vmatprep.subr.bf16.mxu1 %v610_v40 }
  0x36   :  { %613 = vmatpush3.bf16.msra.mxu0 %v610_v40  ;;  %629 = vmatpush3.bf16.msra.mxu1 %v610_v40 }
  0x94   :  { %v69_v43 = vpop.permute.xlu1 %68  ;;  %v64_v44 = vpop.permute.xlu0 %63 }
  0x95   :  { %v142_v45 = vmul.f32 %v69_v43, %v30_v41  ;;  %v141_v46 = vmul.f32 %v64_v44, %v29_v42 }
  0x97   :  { %558 = vmatprep.mubr.f32.mxu0 %v141_v46 }
  0x98   :  { %v109_v49 = vpop.permute.xlu1 %108  ;;  %v104_v50 = vpop.permute.xlu0 %103  ;;  %559 = vmatmul.mubr.f32.vlgmr.msra.gmra.mrb[0].mxu0 %v142_v45 }
  0x99   :  { %v150_v51 = vmul.f32 %v109_v49, %v38_v47  ;;  %v149_v52 = vmul.f32 %v104_v50, %v37_v48 }
  0x9b   :  { %570 = vmatprep.mubr.f32.mxu1 %v149_v52 }
  0x9c   :  { %v114_v55 = vpop.permute.xlu1 %113  ;;  %v74_v56 = vpop.permute.xlu0 %73  ;;  %571 = vmatmul.mubr.f32.vlgmr.msra.gmra.mrb[0].mxu1 %v150_v51 }
  0x9d   :  { %v151_v57 = vmul.f32 %v114_v55, %v39_v53  ;;  %v143_v58 = vmul.f32 %v74_v56, %v31_v54 }
  0x9f   :  { %561 = vmatprep.mubr.f32.mxu0 %v143_v58  ;;  %573 = vmatprep.mubr.f32.mxu1 %v151_v57 }
  0xa0   :  { %v119_v61 = vpop.permute.xlu1 %118  ;;  %v79_v62 = vpop.permute.xlu0 %78 }
  0xa1   :  { %v152_v63 = vmul.f32 %v119_v61, %v40_v59  ;;  %v144_v0 = vmul.f32 %v79_v62, %v32_v60 }
  0xa3   :  { %562 = vmatmul.mubr.f32.gmra.mrb[2].mxu0 %v144_v0  ;;  %574 = vmatmul.mubr.f32.gmra.mrb[2].mxu1 %v152_v63 }
  0xa4   :  { %v124_v3 = vpop.permute.xlu1 %123  ;;  %v84_v4 = vpop.permute.xlu0 %83 }
  0xa5   :  { %v153_v5 = vmul.f32 %v124_v3, %v41_v1  ;;  %v145_v6 = vmul.f32 %v84_v4, %v33_v2 }
  0xa7   :  { %564 = vmatprep.mubr.f32.mxu0 %v145_v6  ;;  %576 = vmatprep.mubr.f32.mxu1 %v153_v5 }
  0xa8   :  { %v129_v9 = vpop.permute.xlu1 %128  ;;  %v89_v10 = vpop.permute.xlu0 %88 }
  0xa9   :  { %v154_v11 = vmul.f32 %v129_v9, %v42_v7  ;;  %v146_v12 = vmul.f32 %v89_v10, %v34_v8 }
  0xab   :  { %565 = vmatmul.mubr.f32.gmra.mrb[4].mxu0 %v146_v12  ;;  %577 = vmatmul.mubr.f32.gmra.mrb[4].mxu1 %v154_v11 }
  0xac   :  { %v134_v15 = vpop.permute.xlu1 %133  ;;  %v94_v16 = vpop.permute.xlu0 %93 }
  0xad   :  { %v155_v17 = vmul.f32 %v134_v15, %v43_v13  ;;  %v147_v18 = vmul.f32 %v94_v16, %v35_v14 }
  0xaf   :  { %567 = vmatprep.mubr.f32.mxu0 %v147_v18  ;;  %579 = vmatprep.mubr.f32.mxu1 %v155_v17 }
  0xb0   :  { %v139_v21 = vpop.permute.xlu1 %138  ;;  %v99_v22 = vpop.permute.xlu0 %98 }
  0xb1   :  { %v156_v23 = vmul.f32 %v139_v21, %v44_v19  ;;  %v148_v24 = vmul.f32 %v99_v22, %v36_v20 }
  0xb3   :  { %568 = vmatmul.mubr.f32.gmra.mrb[6].mxu0 %v148_v24  ;;  %580 = vmatmul.mubr.f32.gmra.mrb[6].mxu1 %v156_v23 }
 0x16b   :  { %v560_v25 = vpop.f32.mrb[0].mxu0 }
 0x16c   :  { %v239_v26 = vpop.f32.mrb[1].mxu0 }
 0x16d   :  { %v450_v27 = vpack.c.bf16 %v560_v25, %v239_v26 }
 0x16f   :  { %451 = vst [vmem:[#allocation5] sm:$0xff] %v450_v27   ;;  %v572_v28 = vpop.f32.mrb[0].mxu1 }
 0x170   :  { %v279_v29 = vpop.f32.mrb[1].mxu1 }
 0x171   :  { %v470_v30 = vpack.c.bf16 %v572_v28, %v279_v29 }
 0x173   :  { %490 = vst [vmem:[#allocation5 + $0x20] sm:$0xff] %v470_v30  }
 0x176   :  { %v563_v31 = vpop.f32.mrb[2].mxu0  ;;  %v575_v32 = vpop.f32.mrb[2].mxu1 }
 0x177   :  { %v249_v33 = vpop.f32.mrb[3].mxu0  ;;  %v289_v34 = vpop.f32.mrb[3].mxu1 }
 0x178   :  { %v455_v35 = vpack.c.bf16 %v563_v31, %v249_v33  ;;  %v475_v36 = vpack.c.bf16 %v575_v32, %v289_v34 }
 0x17a   :  { %487 = vst [vmem:[#allocation5 + $0x8] sm:$0xff] %v455_v35   ;;  %491 = vst [vmem:[#allocation5 + $0x28] sm:$0xff] %v475_v36  }
 0x17e   :  { %v566_v37 = vpop.f32.mrb[4].mxu0  ;;  %v578_v38 = vpop.f32.mrb[4].mxu1 }
 0x17f   :  { %v259_v39 = vpop.f32.mrb[5].mxu0  ;;  %v299_v40 = vpop.f32.mrb[5].mxu1 }
 0x180   :  { %v460_v41 = vpack.c.bf16 %v566_v37, %v259_v39  ;;  %v480_v42 = vpack.c.bf16 %v578_v38, %v299_v40 }
 0x182   :  { %488 = vst [vmem:[#allocation5 + $0x10] sm:$0xff] %v460_v41   ;;  %492 = vst [vmem:[#allocation5 + $0x30] sm:$0xff] %v480_v42  }
 0x186   :  { %v569_v43 = vpop.f32.mrb[6].mxu0  ;;  %v581_v44 = vpop.f32.mrb[6].mxu1 }
 0x187   :  { %v269_v45 = vpop.f32.mrb[7].mxu0  ;;  %v309_v46 = vpop.f32.mrb[7].mxu1 }
 0x188   :  { %v465_v47 = vpack.c.bf16 %v569_v43, %v269_v45  ;;  %v485_v48 = vpack.c.bf16 %v581_v44, %v309_v46 }
 0x18a   :  { %489 = vst [vmem:[#allocation5 + $0x18] sm:$0xff] %v465_v47   ;;  %493 = vst [vmem:[#allocation5 + $0x38] sm:$0xff] %v485_v48  }
 0x18b   :  { %672 = shalt.err (!%p669_p12)
}
 0x18c   :  { %s673_s8 = scalar_lea.hbm %s837_s3, 1024 }
 0x18d   :  { %p674_p13 = scmp.ne.s32.totalorder %s837_s3, %s673_s8  ;;  %p677_p0 = scmp.lt.u32.totalorder %s673_s8, %s837_s3 }
 0x18f   :  { %p679_p1 = pnand %p677_p0, %p674_p13 }
 0x191   :  { %682 = shalt.err (!%p679_p1)
}
 0x192   :  { %s692_s13 = smov 64   ;;  %s693_s14 = smov 4  }
 0x193   :  { %409 = dma.vmem_to_hbm [thread:$0]  %s404_s2, 1024, %s837_s3, [#allocation4], %s692_s13, %s692_s13, %s693_s14  }
 0x194   :  { %685 = dma.done.wait [#allocation4], 1024  }
 0x195   :  { %686 = vsyncadd [#allocation4], 4294966272 }
 0x196   :  { %413 = vsyncpa [#allocation3], 1 }
 0x197   :  { %414 = vsyncpa [#allocation4], 1 }

</bundles_post_ra>
